<compile_context>
chip_gen: v5e
topology: v5e:2x2
jax: 0.10.0
libtpu: 0.0.40
codegen_flags: <defaults>
</compile_context>

<pallas_src>
import functools

import jax
import jax.numpy as jnp
from jax.experimental import pallas as pl
from jax.experimental.pallas import tpu as pltpu

NEG_SLOPE = 0.01  # nn.LeakyReLU() default
_MiB = 1024 * 1024


def _round_up(x, m):
    return ((x + m - 1) // m) * m


def _leaky_relu(x):
    return jnp.where(x > 0, x, NEG_SLOPE * x)


# --------------------------------------------------------------------------- #
# Kernel
# --------------------------------------------------------------------------- #
def aux_mlp_kernel(x_ref, w1_ref, b1_ref, w2_ref, b2_ref, wh_ref, bh_ref, out_ref):
    # x tile arrives fp32; cast to bf16 in-register (avoids a standalone XLA
    # cast pass over the whole x tensor).
    x = x_ref[...].astype(jnp.bfloat16)                                # (TM, d_model)
    h = jnp.dot(x, w1_ref[...], preferred_element_type=jnp.float32) + b1_ref[...]
    # Cast BEFORE the activation: bf16 VALU on v6e/v7x halves cmp/select work.
    h = _leaky_relu(h.astype(jnp.bfloat16))                            # (TM, hidden)
    h = jnp.dot(h, w2_ref[...], preferred_element_type=jnp.float32) + b2_ref[...]
    h = _leaky_relu(h.astype(jnp.bfloat16))                            # (TM, hidden)
    # Fused, lane-dense parents|children head -> one unmasked vst per tile.
    out_ref[...] = (
        jnp.dot(h, wh_ref[...], preferred_element_type=jnp.float32) + bh_ref[...]
    )                                                                  # (TM, n_pad)


# --------------------------------------------------------------------------- #
# Sizing helpers
# --------------------------------------------------------------------------- #
def _vmem_footprint_bytes(TM, d_model, hidden, n_pad, x_bufs, out_bufs):
    x_tiles = x_bufs * TM * d_model * 4                     # streamed fp32 input tiles
    out_tiles = out_bufs * TM * n_pad * 4                   # streamed fp32 output tiles
    weights = 2 * (d_model * hidden + hidden * hidden + hidden * n_pad)  # bf16, Buffered(1)
    biases = 4 * 8 * (2 * _round_up(hidden, 128) + n_pad)   # (1,N) pads to (8, round128)
    work = TM * (12 * hidden + 4 * n_pad)                   # f32+bf16 intermediates (estimate)
    return x_tiles + out_tiles + weights + biases + work


def _choose_tm(M, tm_req, d_model, hidden, n_pad, *, ceiling_bytes):
    # TM must be a multiple of 8 (sublane) whenever it is smaller than M_pad.
    tm_req = max(8, _round_up(int(tm_req), 8))
    # Keep the grid at >= 4 steps so ("parallel",) megacore sharding on v7x
    # gives each TensorCore >= 2 pipelined steps.
    tm_cap = max(8, _round_up(pl.cdiv(M, 4), 8))
    TM = min(tm_req, tm_cap)
    # Shrink TM (instead of hard-capping VMEM) until the footprint fits.
    while TM > 8 and _vmem_footprint_bytes(TM, d_model, hidden, n_pad, 3, 2) > ceiling_bytes:
        TM = max(8, _round_up(TM // 2, 8))
    return TM


# --------------------------------------------------------------------------- #
# Forward (jit-wrapped so layout glue fuses with the kernel output copy)
# --------------------------------------------------------------------------- #
@functools.partial(jax.jit, static_argnames=("n_nodes", "tm"))
def aux_mlp_forward(x, w1, b1, w2, b2, wh, bh, *, n_nodes, tm=1024):
    """x: (B, S, d_model) float32; weights bf16 / fused head from prepare_params.

    Returns (parents: (1, B*S*n_nodes), children: (1, B*n_nodes*S)), matching
    the PyTorch module's
    (parents.view(1, -1), children.transpose(1, 2).reshape(1, -1)).
    """
    B, S, d_model = x.shape
    hidden = w1.shape[1]
    n_pad = wh.shape[1]
    n_real = 2 * n_nodes

    M = B * S
    TM = _choose_tm(M, tm, d_model, hidden, n_pad, ceiling_bytes=52 * _MiB)
    M_pad = _round_up(M, TM)
    n_tiles = M_pad // TM
    # Deeper x prefetch only helps when the grid is long enough to fill it.
    x_bufs = 2 if n_tiles <= 2 else 3

    # Resident (single-buffered) bf16 weights must fit v7x's 64 MiB VMEM.
    resident_weight_bytes = 2 * (d_model * hidden + hidden * hidden + hidden * n_pad)
    # TODO(synk): if resident_weight_bytes exceeds ~40 MiB (very large hidden on
    # v7x), add a second "arbitrary" grid axis over hidden with an fp32 VMEM
    # accumulator instead of keeping fc2's weight fully resident.
    assert resident_weight_bytes <= 40 * _MiB, "hidden too large for resident-weight design"

    # Host-side prep: pure layout only (no dtype casts here).
    x2d = x.reshape(M, d_model)
    if M_pad != M:
        x2d = jnp.pad(x2d, ((0, M_pad - M), (0, 0)))

    footprint = _vmem_footprint_bytes(TM, d_model, hidden, n_pad, x_bufs, 2)
    vmem_limit = int(min(56 * _MiB, max(32 * _MiB, footprint + 2 * _MiB)))

    flops = 2 * M_pad * (d_model * hidden + hidden * hidden + hidden * n_pad)
    bytes_accessed = (
        M_pad * d_model * 4                                           # x (fp32)
        + 2 * (d_model * hidden + hidden * hidden + hidden * n_pad)   # weights (bf16)
        + 4 * (2 * hidden + n_pad)                                    # biases (fp32)
        + M_pad * n_pad * 4                                           # output (fp32)
    )
    cost = pl.CostEstimate(flops=flops, transcendentals=0, bytes_accessed=bytes_accessed)

    resident = lambda i: (0, 0)
    out2d = pl.pallas_call(
        aux_mlp_kernel,
        out_shape=jax.ShapeDtypeStruct((M_pad, n_pad), jnp.float32),
        grid=(n_tiles,),
        in_specs=[
            pl.BlockSpec((TM, d_model), lambda i: (i, 0),
                         pipeline_mode=pl.Buffered(x_bufs)),                       # x (streamed)
            pl.BlockSpec((d_model, hidden), resident, pipeline_mode=pl.Buffered(1)),  # w1
            pl.BlockSpec((1, hidden), resident, pipeline_mode=pl.Buffered(1)),        # b1
            pl.BlockSpec((hidden, hidden), resident, pipeline_mode=pl.Buffered(1)),   # w2
            pl.BlockSpec((1, hidden), resident, pipeline_mode=pl.Buffered(1)),        # b2
            pl.BlockSpec((hidden, n_pad), resident, pipeline_mode=pl.Buffered(1)),    # wh fused
            pl.BlockSpec((1, n_pad), resident, pipeline_mode=pl.Buffered(1)),         # bh fused
        ],
        out_specs=pl.BlockSpec((TM, n_pad), lambda i: (i, 0)),
        compiler_params=pltpu.CompilerParams(
            dimension_semantics=("parallel",),
            vmem_limit_bytes=vmem_limit,
        ),
        cost_estimate=cost,
    )(x2d, w1, b1, w2, b2, wh, bh)

    # Wrapper glue (pure layout) — fused by XLA since it lives in the same jit.
    out2d = out2d[:M, :n_real]                          # drop row/col padding
    parents2d = out2d[:, :n_nodes]                      # (M, n_nodes)
    children2d = out2d[:, n_nodes:]                     # (M, n_nodes)

    parents = parents2d.reshape(1, -1)                  # parents.view(1, -1)
    # TODO(synk): fold this transpose into a second kernel output written in
    # (B, n_nodes, S) layout to save one HBM pass on the children tensor.
    children = (children2d.reshape(B, S, n_nodes)
                .transpose(0, 2, 1)
                .reshape(1, -1))                        # children.transpose(1,2).reshape(1,-1)
    return parents, children


# --------------------------------------------------------------------------- #
# Parameter init / one-time prep / fp32 reference
# --------------------------------------------------------------------------- #
def init_params(key, d_model, hidden, n_nodes):
    ks = jax.random.split(key, 8)

    def linear(kw, kb, fan_in, fan_out):
        bound = 1.0 / jnp.sqrt(fan_in)
        w = jax.random.uniform(kw, (fan_in, fan_out), jnp.float32, -bound, bound)
        b = jax.random.uniform(kb, (1, fan_out), jnp.float32, -bound, bound)
        return w, b

    w1, b1 = linear(ks[0], ks[1], d_model, hidden)
    w2, b2 = linear(ks[2], ks[3], hidden, hidden)
    wp, bp = linear(ks[4], ks[5], hidden, n_nodes)
    wc, bc = linear(ks[6], ks[7], hidden, n_nodes)
    return (w1, b1, w2, b2, wp, bp, wc, bc)


def prepare_params(params):
    """One-time prep: bf16 weight casts + fused, lane-dense (128-mult) head.

    Done once at init instead of per forward call (removes per-call HBM passes).
    """
    w1, b1, w2, b2, wp, bp, wc, bc = params
    n_nodes = wp.shape[1]
    n_real = 2 * n_nodes
    n_pad = max(128, _round_up(n_real, 128))

    wh = jnp.concatenate([wp, wc], axis=1)              # (hidden, 2*n_nodes)
    bh = jnp.concatenate([bp, bc], axis=1)              # (1, 2*n_nodes)
    if n_pad != n_real:
        wh = jnp.pad(wh, ((0, 0), (0, n_pad - n_real)))
        bh = jnp.pad(bh, ((0, 0), (0, n_pad - n_real)))

    prepared = dict(
        w1=w1.astype(jnp.bfloat16), b1=b1,
        w2=w2.astype(jnp.bfloat16), b2=b2,
        wh=wh.astype(jnp.bfloat16), bh=bh,
    )
    return prepared, n_nodes


def reference_forward(x, params):
    """Pure-JAX fp32 reference mirroring the PyTorch module."""
    w1, b1, w2, b2, wp, bp, wc, bc = params
    h = jax.nn.leaky_relu(x @ w1 + b1, NEG_SLOPE)
    h = jax.nn.leaky_relu(h @ w2 + b2, NEG_SLOPE)
    parents = (h @ wp + bp).reshape(1, -1)
    children = (h @ wc + bc).transpose(0, 2, 1).reshape(1, -1)
    return parents, children


if __name__ == "__main__":
    B, S = 2, 8
    d_model, hidden, n_nodes = 32, 32, 16

    key = jax.random.PRNGKey(0)
    kx, kp = jax.random.split(key)
    x = jax.random.normal(kx, (B, S, d_model), jnp.float32)
    params = init_params(kp, d_model, hidden, n_nodes)
    prepared, n_nodes_static = prepare_params(params)

    parents, children = aux_mlp_forward(
        x,
        prepared["w1"], prepared["b1"],
        prepared["w2"], prepared["b2"],
        prepared["wh"], prepared["bh"],
        n_nodes=n_nodes_static,
    )
    parents = jax.block_until_ready(parents)
    children = jax.block_until_ready(children)

    ref_p, ref_c = reference_forward(x, params)
    assert parents.shape == (1, B * S * n_nodes)
    assert children.shape == (1, B * n_nodes * S)
    # bf16 matmuls with fp32 accumulation -> loosened tolerance vs fp32 reference.
    assert jnp.allclose(parents, ref_p, atol=5e-2, rtol=5e-2)
    assert jnp.allclose(children, ref_c, atol=5e-2, rtol=5e-2)

    print("KERNEL_OK")
</pallas_src>

<mosaic_0001>
module attributes {stable_mosaic.version = 11 : i64} {
  func.func @aux_mlp_kernel(%arg0: i32, %arg1: memref<8x32xf32, #tpu.memory_space<vmem>>, %arg2: memref<32x32xbf16, #tpu.memory_space<vmem>>, %arg3: memref<1x32xf32, #tpu.memory_space<vmem>>, %arg4: memref<32x32xbf16, #tpu.memory_space<vmem>>, %arg5: memref<1x32xf32, #tpu.memory_space<vmem>>, %arg6: memref<32x128xbf16, #tpu.memory_space<vmem>>, %arg7: memref<1x128xf32, #tpu.memory_space<vmem>>, %arg8: memref<8x128xf32, #tpu.memory_space<vmem>>) attributes {dimension_semantics = [#tpu.dimension_semantics<parallel>], iteration_bounds = array<i64: 2>, scalar_prefetch = 0 : i64, scratch_operands = 0 : i64, tpu.core_type = #tpu.core_type<tc>, window_params = [{pipeline_mode = #tpu.pipeline_mode<double_buffered>, transform_indices = @transform_0, window_bounds = array<i64: 8, 32>}, {pipeline_mode = #tpu.pipeline_mode<synchronous>, transform_indices = @transform_1, window_bounds = array<i64: 32, 32>}, {pipeline_mode = #tpu.pipeline_mode<synchronous>, transform_indices = @transform_2, window_bounds = array<i64: 1, 32>}, {pipeline_mode = #tpu.pipeline_mode<synchronous>, transform_indices = @transform_3, window_bounds = array<i64: 32, 32>}, {pipeline_mode = #tpu.pipeline_mode<synchronous>, transform_indices = @transform_4, window_bounds = array<i64: 1, 32>}, {pipeline_mode = #tpu.pipeline_mode<synchronous>, transform_indices = @transform_5, window_bounds = array<i64: 32, 128>}, {pipeline_mode = #tpu.pipeline_mode<synchronous>, transform_indices = @transform_6, window_bounds = array<i64: 1, 128>}, {transform_indices = @transform_7, window_bounds = array<i64: 8, 128>}]} {
    %c0 = arith.constant 0 : index
    %c0_0 = arith.constant 0 : index
    %0 = vector.load %arg1[%c0, %c0_0] : memref<8x32xf32, #tpu.memory_space<vmem>>, vector<8x32xf32>
    %1 = arith.truncf %0 : vector<8x32xf32> to vector<8x32xbf16>
    %c0_1 = arith.constant 0 : index
    %c0_2 = arith.constant 0 : index
    %2 = vector.load %arg2[%c0_1, %c0_2] : memref<32x32xbf16, #tpu.memory_space<vmem>>, vector<32x32xbf16>
    %cst = arith.constant dense<0.000000e+00> : vector<8x32xf32>
    %3 = tpu.matmul %1, %2, %cst {dimension_numbers = #tpu.dot_dimension_numbers<[1], [0], [0], [1], [0, 0, 1, 1], [], []>} : vector<8x32xbf16>, vector<32x32xbf16>, vector<8x32xf32> -> vector<8x32xf32>
    %c0_3 = arith.constant 0 : index
    %c0_4 = arith.constant 0 : index
    %4 = vector.load %arg3[%c0_3, %c0_4] : memref<1x32xf32, #tpu.memory_space<vmem>>, vector<1x32xf32>
    %5 = vector.broadcast %4 : vector<1x32xf32> to vector<8x32xf32>
    %6 = arith.addf %3, %5 : vector<8x32xf32>
    %7 = arith.truncf %6 : vector<8x32xf32> to vector<8x32xbf16>
    %cst_5 = arith.constant 0.000000e+00 : bf16
    %8 = vector.broadcast %cst_5 : bf16 to vector<8x32xbf16>
    %9 = arith.cmpf ogt, %7, %8 : vector<8x32xbf16>
    %cst_6 = arith.constant 1.000980e-02 : bf16
    %10 = vector.broadcast %cst_6 : bf16 to vector<8x32xbf16>
    %11 = arith.mulf %10, %7 : vector<8x32xbf16>
    %12 = arith.select %9, %7, %11 : vector<8x32xi1>, vector<8x32xbf16>
    %c0_7 = arith.constant 0 : index
    %c0_8 = arith.constant 0 : index
    %13 = vector.load %arg4[%c0_7, %c0_8] : memref<32x32xbf16, #tpu.memory_space<vmem>>, vector<32x32xbf16>
    %cst_9 = arith.constant dense<0.000000e+00> : vector<8x32xf32>
    %14 = tpu.matmul %12, %13, %cst_9 {dimension_numbers = #tpu.dot_dimension_numbers<[1], [0], [0], [1], [0, 0, 1, 1], [], []>} : vector<8x32xbf16>, vector<32x32xbf16>, vector<8x32xf32> -> vector<8x32xf32>
    %c0_10 = arith.constant 0 : index
    %c0_11 = arith.constant 0 : index
    %15 = vector.load %arg5[%c0_10, %c0_11] : memref<1x32xf32, #tpu.memory_space<vmem>>, vector<1x32xf32>
    %16 = vector.broadcast %15 : vector<1x32xf32> to vector<8x32xf32>
    %17 = arith.addf %14, %16 : vector<8x32xf32>
    %18 = arith.truncf %17 : vector<8x32xf32> to vector<8x32xbf16>
    %cst_12 = arith.constant 0.000000e+00 : bf16
    %19 = vector.broadcast %cst_12 : bf16 to vector<8x32xbf16>
    %20 = arith.cmpf ogt, %18, %19 : vector<8x32xbf16>
    %cst_13 = arith.constant 1.000980e-02 : bf16
    %21 = vector.broadcast %cst_13 : bf16 to vector<8x32xbf16>
    %22 = arith.mulf %21, %18 : vector<8x32xbf16>
    %23 = arith.select %20, %18, %22 : vector<8x32xi1>, vector<8x32xbf16>
    %c0_14 = arith.constant 0 : index
    %c0_15 = arith.constant 0 : index
    %24 = vector.load %arg6[%c0_14, %c0_15] : memref<32x128xbf16, #tpu.memory_space<vmem>>, vector<32x128xbf16>
    %cst_16 = arith.constant dense<0.000000e+00> : vector<8x128xf32>
    %25 = tpu.matmul %23, %24, %cst_16 {dimension_numbers = #tpu.dot_dimension_numbers<[1], [0], [0], [1], [0, 0, 1, 1], [], []>} : vector<8x32xbf16>, vector<32x128xbf16>, vector<8x128xf32> -> vector<8x128xf32>
    %c0_17 = arith.constant 0 : index
    %c0_18 = arith.constant 0 : index
    %26 = vector.load %arg7[%c0_17, %c0_18] : memref<1x128xf32, #tpu.memory_space<vmem>>, vector<1x128xf32>
    %27 = vector.broadcast %26 : vector<1x128xf32> to vector<8x128xf32>
    %28 = arith.addf %25, %27 : vector<8x128xf32>
    %c0_19 = arith.constant 0 : index
    %c0_20 = arith.constant 0 : index
    %29 = vector.load %arg8[%c0_19, %c0_20] : memref<8x128xf32, #tpu.memory_space<vmem>>, vector<8x128xf32>
    tpu.vector_store %arg8[%c0_19, %c0_20], %28 {strides = array<i32>} : memref<8x128xf32, #tpu.memory_space<vmem>>, vector<8x128xf32>,
    return
  }
  func.func @transform_0(%arg0: i32) -> (i32, i32) {
    %c0_i32 = arith.constant 0 : i32
    %c0_i32_0 = arith.constant 0 : i32
    return %arg0, %c0_i32 : i32, i32
  }
  func.func @transform_1(%arg0: i32) -> (i32, i32) {
    %c0_i32 = arith.constant 0 : i32
    %c0_i32_0 = arith.constant 0 : i32
    %c0_i32_1 = arith.constant 0 : i32
    return %c0_i32, %c0_i32_0 : i32, i32
  }
  func.func @transform_2(%arg0: i32) -> (i32, i32) {
    %c0_i32 = arith.constant 0 : i32
    %c0_i32_0 = arith.constant 0 : i32
    %c0_i32_1 = arith.constant 0 : i32
    return %c0_i32, %c0_i32_0 : i32, i32
  }
  func.func @transform_3(%arg0: i32) -> (i32, i32) {
    %c0_i32 = arith.constant 0 : i32
    %c0_i32_0 = arith.constant 0 : i32
    %c0_i32_1 = arith.constant 0 : i32
    return %c0_i32, %c0_i32_0 : i32, i32
  }
  func.func @transform_4(%arg0: i32) -> (i32, i32) {
    %c0_i32 = arith.constant 0 : i32
    %c0_i32_0 = arith.constant 0 : i32
    %c0_i32_1 = arith.constant 0 : i32
    return %c0_i32, %c0_i32_0 : i32, i32
  }
  func.func @transform_5(%arg0: i32) -> (i32, i32) {
    %c0_i32 = arith.constant 0 : i32
    %c0_i32_0 = arith.constant 0 : i32
    %c0_i32_1 = arith.constant 0 : i32
    return %c0_i32, %c0_i32_0 : i32, i32
  }
  func.func @transform_6(%arg0: i32) -> (i32, i32) {
    %c0_i32 = arith.constant 0 : i32
    %c0_i32_0 = arith.constant 0 : i32
    %c0_i32_1 = arith.constant 0 : i32
    return %c0_i32, %c0_i32_0 : i32, i32
  }
  func.func @transform_7(%arg0: i32) -> (i32, i32) {
    %c0_i32 = arith.constant 0 : i32
    %c0_i32_0 = arith.constant 0 : i32
    return %arg0, %c0_i32 : i32, i32
  }
}

</mosaic_0001>

<bundles_post_ra>
// kernel: aux_mlp_forward.1
= control target key start
LH: loop header
LB: loop body
LE: loop exit
PB: predicated region body
PF: predicated region fallthrough
CT: control target
= control target key end

     0   :  { %12 = vsyncpa [#allocation3], 0  ;;  %s1038_s0 = inlined_call_operand.hbm [shape: f32[16,32], index: 0, kind: input, shape index: {}]   ;;  %s1039_s1 = inlined_call_operand.hbm [shape: bf16[32,32], index: 1, kind: input, shape index: {}]   ;;  %s1040_s2 = inlined_call_operand.vmem [shape: f32[1,32], index: 2, kind: input, shape index: {}]   ;;  %s1041_s3 = inlined_call_operand.hbm [shape: bf16[32,32], index: 3, kind: input, shape index: {}]   ;;  %s1042_s4 = inlined_call_operand.vmem [shape: f32[1,32], index: 4, kind: input, shape index: {}]   ;;  %s1043_s5 = inlined_call_operand.hbm [shape: bf16[32,128], index: 5, kind: input, shape index: {}]   ;;  %s1044_s6 = inlined_call_operand.vmem [shape: f32[1,128], index: 6, kind: input, shape index: {}]   ;;  %s1045_s7 = inlined_call_operand.vmem [shape: f32[16,128], index: 7, kind: output, shape index: {}]  }
   0x1   :  { %14 = vsyncpa [#allocation3 + $0x1], 0 }
   0x2   :  { %15 = vsyncpa [#allocation5], 0 }
   0x3   :  { %16 = vsyncpa [#allocation8], 0  ;;  %s900_s24 = smov 0   ;;  %s902_s25 = smov 0  }
   0x4   :  { %s904_s26 = smov 0   ;;  %s906_s27 = smov 0  }
   0x5 LB: > { %s216_s30 = sshll.u32 %s1039_s1, 4  ;;  %s924_s8 = sadd.s32 4294967295, %s853_s27   ;;  %s853_s27 = sphi %s906_s27, %s1053_s27   ;;  %s849_s26 = sphi %s904_s26, %s1052_s26   ;;  %s845_s25 = sphi %s902_s25, %s1051_s25   ;;  %s841_s24 = sphi %s900_s24, %s1050_s24   ;;  %s217_s30 = int_to_ptr.hbm [resolvable:$true] %s216_s30 }
   0x6   : > { %p568_p0 = scmp.ge.s32.totalorder %s853_s27, 1  ;;  %p43_p1 = scmp.eq.s32.totalorder %s924_s8, 0 }
   0x7   : > { %p205_p2 = scmp.lt.s32.totalorder %s853_s27, 3  ;;  %s855_s10 = smov [#allocation4]  }
   0x8   : > { %s218_s11 = sshll.u32 %s855_s10, 4  ;;  %s233_s14 = sshll.u32 %s1041_s3, 4  ;;  %s219_s11 = int_to_ptr.vmem [resolvable:$true] %s218_s11  ;;  %s234_s14 = int_to_ptr.hbm [resolvable:$true] %s233_s14 }
   0x9   : > { %p929_p3 = pnand %p568_p0, %p205_p2  ;;  %s250_s18 = sshll.u32 %s1043_s5, 4  ;;  %s251_s18 = int_to_ptr.hbm [resolvable:$true] %s250_s18 }
   0xa   : > { %s856_s19 = smov [#allocation6]   ;;  %s857_s21 = smov 64  }
   0xb   : > { %p630_p4 = pneg %p929_p3  ;;  %s235_s20 = sshll.u32 %s856_s19, 4  ;;  %s236_s20 = int_to_ptr.vmem [resolvable:$true] %s235_s20 }
   0xc   : > { %s858_s22 = smov 4   ;;  %s859_s23 = smov [#allocation7]  }
   0xd   : > { %p940_p5 = pnand %p630_p4, %p43_p1  ;;  %s252_s28 = sshll.u32 %s859_s23, 4  ;;  %s253_s28 = int_to_ptr.vmem [resolvable:$true] %s252_s28 }
   0xe   : > { %s954_s29 = sadd.s32 1, %s853_s27   ;;  %s29_s12 = sadd.s32 1, %s849_s26 }
   0xf   : > { %633 = dma.hbm_to_vmem [thread:$0]  (!%p940_p5), %s217_s30, 256, %s219_s11, [#allocation5], %s857_s21, %s857_s21, %s858_s22  }
  0x10   : > { %636 = dma.hbm_to_vmem [thread:$0]  (!%p940_p5), %s234_s14, 256, %s236_s20, [#allocation5], %s857_s21, %s857_s21, %s858_s22  }
  0x11   : > { %639 = dma.hbm_to_vmem [thread:$0]  (!%p940_p5), %s251_s18, 256, %s253_s28, [#allocation8], %s857_s21, %s857_s21, %s858_s22  }
  0x12   : > { %s26_s10 = ssub.s32 %s853_s27, %s954_s29  ;;  %p36_p7 = scmp.ne.s32.totalorder %s849_s26, %s845_s25 }
  0x13   : > { %p27_p6 = scmp.eq.s32.totalorder %s26_s10, 0  ;;  %p37_p8 = scmp.eq.s32.totalorder %s853_s27, 0 }
  0x14   : > { %p42_p9 = scmp.ne.s32.totalorder %s845_s25, %s841_s24  ;;  %p647_p12 = scmp.lt.s32.totalorder %s853_s27, 2 }
  0x15   : > { %s965_s30 = scalar_select %p27_p6, %s849_s26, %s29_s12  }
  0x16   : > { %p38_p10 = por %p37_p8, %p36_p7  ;;  %p969_p11 = por %p43_p1, %p42_p9 }
  0x17   : > { %s269_s13 = sand.u32 1, %s849_s26   ;;  %s574_s15 = sshll.u32 %s853_s27, 3 }
  0x18   : > { %s573_s14 = sshll.u32 %s269_s13, 3  ;;  %s277_s18 = scalar_lea.hbm %s1038_s0, %s574_s15 }
  0x19   : > { %s273_s19 = scalar_lea.vmem [#allocation2], %s573_s14  ;;  %s279_s21 = sshll.u32 %s277_s18, 4  ;;  %s280_s21 = int_to_ptr.hbm [resolvable:$true] %s279_s21 }
  0x1a   : > { %s281_s20 = sshll.u32 %s273_s19, 4  ;;  %p979_p13 = pnand %p647_p12, %p38_p10  ;;  %s282_s20 = int_to_ptr.vmem [resolvable:$true] %s281_s20 }
  0x1b   : > { %s270_s22 = scalar_lea.sflag [#allocation3], %s269_s13  ;;  %s781_s23 = sshra.s32 %s280_s21, 4  ;;  %s782_s23 = int_to_ptr.hbm [resolvable:$true] %s781_s23 }
  0x1c   : > { %s783_s28 = scalar_lea.hbm %s782_s23, 8  ;;  %p785_p2 = pneg %p979_p13 }
  0x1d   : > { %p784_p0 = scmp.ne.s32.totalorder %s782_s23, %s783_s28  ;;  %s788_s12 = scalar_lea.hbm %s1038_s0, 16 }
  0x1e   : > { %p789_p6 = scmp.lt.s32.totalorder %s782_s23, %s1038_s0  ;;  %p790_p7 = scmp.lt.s32.totalorder %s788_s12, %s783_s28 }
  0x1f   : > { %p786_p4 = pnand %p785_p2, %p784_p0 }
  0x20   : > { %p791_p8 = por %p790_p7, %p789_p6 }
  0x21   : > { %p787_p5 = pneg %p786_p4 }
  0x23   : > { %p792_p9 = pnand %p791_p8, %p787_p5 }
  0x25   : > { %795 = shalt.err (!%p792_p9)
}
  0x26   : > { %643 = dma.hbm_to_vmem [thread:$0]  (!%p979_p13), %s280_s21, 128, %s282_s20, %s270_s22  }
  0x27   : > { %290 = sbr.rel (%p929_p3) target bundleno = 471 (0x1d7), region = 48  ;;  %s292_s13 = sand.u32 (!%p929_p3), 1, %s845_s25  }
  0x28   : > { %s576_s16 = sshll.u32 (!%p929_p3), %s292_s13, 3  ;;  %s293_s17 = scalar_lea.sflag (!%p929_p3), [#allocation3], %s292_s13 }
  0x29   : > { %s296_s18 = scalar_lea.vmem (!%p929_p3), [#allocation2], %s576_s16 }
  0x2c   : > { %828 = dma.done.wait (%p969_p11), %s293_s17, 128  }
  0x2d   : > { %830 = vsyncadd (%p969_p11), %s293_s17, 4294967168 }
  0x2e   : > { %832 = dma.done.wait (%p43_p1), [#allocation5], 512  }
  0x2f   : > { %834 = vsyncadd (%p43_p1), [#allocation5], 4294966784 }
  0x30   : > { %836 = dma.done.wait (%p43_p1), [#allocation8], 256  }
  0x31   : > { %838 = vsyncadd (%p43_p1), [#allocation8], 4294967040  ;;  %v611_v0 = vld [vmem:[#allocation4 + $0x8] sm:$0xff]  ;;  %v610_v1 = vld [vmem:[#allocation4] sm:$0xff]  ;;  %vm369_vm0 = vcmask 261120   ;;  %p342_p1 = scmp.lt.s32.totalorder %s924_s8, 1 }
  0x32   : > { %379 = vmatpush.bf16.msra.mxu0 %v611_v0  ;;  %v347_v2 = vld [vmem:[%s296_s18] sm:$0xff]  ;;  %v615_v15 = vld [vmem:[#allocation7 + $0x8] sm:$0xff]  ;;  %v614_v16 = vld [vmem:[#allocation7] sm:$0xff] }
  0x33   : > { %v348_v3 = vpack.c.bf16 %v347_v2, %v347_v2  ;;  %v613_v4 = vld [vmem:[#allocation6 + $0x8] sm:$0xff]  ;;  %v612_v5 = vld [vmem:[#allocation6] sm:$0xff]  ;;  %465 = vmatpush.bf16.msra.mxu2 %v615_v15  ;;  %s1055_s8 = smov (!%p342_p1, %s924_s8), 1 }
  0x34   : > { %422 = vmatpush.bf16.msra.mxu1 %v613_v4  ;;  %v688_v6 = vld [vmem:[%s1040_s2] ss:$0 sm:$0xff]  ;;  %s580_s21 = sshll.u32 %s1055_s8, 3 }
  0x35   : > { %v689_v17 = vld [vmem:[%s1042_s4] ss:$0 sm:$0xff]  ;;  %s345_s27 = scalar_lea.vmem %s1045_s7, %s580_s21 }
  0x36   : > { %380 = vmatpush.bf16.msra.mxu0 %v610_v1  ;;  %v690_v26 = vld [vmem:[%s1044_s6] ss:$0 sm:$0xff] }
  0x37   : > { %466 = vmatpush.bf16.msra.mxu2 %v614_v16 }
  0x38   : > { %423 = vmatpush.bf16.msra.mxu1 %v612_v5 }
  0x39   : > { %589 = vmatmul.msk.bf16.vlgmr.msra.gmra.mxu0 %vm369_vm0, %v348_v3 }
  0xb6   : > { %v382_v7 = vpop.f32.mrf.mxu0 }
  0xb7   : > { %v383_v8 = vadd.f32 %v688_v6, %v382_v7 }
  0xb9   : > { %v386_v9 = vpack.c.bf16 %v383_v8, %v383_v8 }
  0xbb   : > { %v387_v10 = vunpack.c.l.bf16 %v386_v9 }
  0xbd   : > { %v389_v11 = vmul.f32 0.010009766, %v387_v10  ;;  %vm388_vm1 = vcmp.gt.f32.partialorder %v387_v10, 0.0 }
  0xbe   : > { %v384_v12 = vpop.f32.mrf.mxu0  ;;  %vm391_vm2 = vmpackc.low %vm388_vm1, %vm388_vm1 }
  0xbf   : > { %v390_v13 = vpack.c.bf16 %v389_v11, %v389_v11 }
  0xc1   : > { %v392_v14 = vsel %vm391_vm2, %v386_v9, %v390_v13 }
  0xc2   : > { %598 = vmatmul.msk.bf16.vlgmr.msra.gmra.mxu1 %vm369_vm0, %v392_v14 }
 0x13f   : > { %v425_v18 = vpop.f32.mrf.mxu1 }
 0x140   : > { %v426_v19 = vadd.f32 %v689_v17, %v425_v18 }
 0x142   : > { %v429_v20 = vpack.c.bf16 %v426_v19, %v426_v19 }
 0x144   : > { %v430_v21 = vunpack.c.l.bf16 %v429_v20 }
 0x146   : > { %v432_v22 = vmul.f32 0.010009766, %v430_v21  ;;  %vm431_vm3 = vcmp.gt.f32.partialorder %v430_v21, 0.0 }
 0x147   : > { %v427_v23 = vpop.f32.mrf.mxu1  ;;  %vm434_vm4 = vmpackc.low %vm431_vm3, %vm431_vm3 }
 0x148   : > { %v433_v24 = vpack.c.bf16 %v432_v22, %v432_v22 }
 0x14a   : > { %v435_v25 = vsel %vm434_vm4, %v429_v20, %v433_v24 }
 0x14b   : > { %607 = vmatmul.msk.bf16.vlgmr.msra.gmra.mxu2 %vm369_vm0, %v435_v25 }
 0x1ce   : > { %v468_v27 = vpop.f32.mrf.mxu2 }
 0x1cf   : > { %v469_v28 = vadd.f32 %v690_v26, %v468_v27 }
 0x1d1   : > { %472 = vst [vmem:[%s345_s27] sm:$0xff] %v469_v28 }
 0x1d6   : > { %v470_v29 = vpop.f32.mrf.mxu2 }
 0x1d7 PF: > { %p19_p3 = scmp.ge.s32.totalorder %s954_s29, 4   ;;  %s1050_s24 = smov %s845_s25 }
 0x1d8   : > { %s1051_s25 = smov %s849_s26  ;;  %s1052_s26 = smov %s965_s30 }
 0x1d9   : > { %s1053_s27 = smov %s954_s29  ;;  %21 = sbr.rel (!%p19_p3) target bundleno = 5 (0x5), region = 100 }
 0x1de   :  { %492 = vsyncpa [#allocation3], 1 }
 0x1df   :  { %494 = vsyncpa [#allocation3 + $0x1], 1 }
 0x1e0   :  { %495 = vsyncpa [#allocation5], 1 }
 0x1e1   :  { %496 = vsyncpa [#allocation8], 1 }

</bundles_post_ra>
